<compile_context>
chip_gen: v7x
topology: tpu7x:2x2x1
jax: 0.10.0
libtpu: 0.0.40
codegen_flags: <defaults>
</compile_context>

<pallas_src>
import math

import numpy as np
import jax
import jax.numpy as jnp
from jax.experimental import pallas as pl
from jax.experimental.pallas import tpu as pltpu


# ---------------------------------------------------------------------------
# Kernel
# ---------------------------------------------------------------------------
def speclora_kernel(x_ref, w_ref, b_ref, va_ref, ub_ref, out_ref):
    """One (row-tile, column-tile) of the fused QKV + spectral-LoRA projection.

    x_ref  : (TM, D)    activation row tile (compute dtype)
    w_ref  : (D, TN)    pre-transposed frozen QKV weight columns
    b_ref  : (1, TN)    bias columns (f32)
    va_ref : (D, 2r)    folded down-projection  [V_q@A_q.T | V_v@A_v.T]
    ub_ref : (2r, TN)   folded, zero-padded up-projection columns
    out_ref: (TM, TN)
    """
    x = x_ref[...]                                                     # (TM, D)

    # Base QKV projection (weight already transposed -> plain jnp.dot).
    base = jnp.dot(x, w_ref[...], preferred_element_type=jnp.float32)  # (TM, TN)

    # Fused spectral-LoRA update for Q and V in one down/up projection.
    low = jnp.dot(x, va_ref[...], preferred_element_type=jnp.float32)  # (TM, 2r)
    upd = jnp.dot(low.astype(ub_ref.dtype), ub_ref[...],
                  preferred_element_type=jnp.float32)                  # (TM, TN)

    # Single lane-dense store; K columns get exactly +0 from the padded UB.
    out_ref[...] = (base + b_ref[...] + upd).astype(out_ref.dtype)


# ---------------------------------------------------------------------------
# One-time weight folding (hoisted out of the per-call path)
# ---------------------------------------------------------------------------
def fold_speclora_params(params, compute_dtype=jnp.bfloat16):
    """Fold / transpose / cast the frozen weights once."""
    D = params["wqkv"].shape[1]
    r = params["a_q"].shape[0]

    w_t = params["wqkv"].T.astype(compute_dtype)                    # (D, 3D)
    bias = params["bqkv"].reshape(1, 3 * D).astype(jnp.float32)     # (1, 3D)

    va_q = params["V_q"] @ params["a_q"].T                          # (D, r)
    va_v = params["V_v"] @ params["a_v"].T                          # (D, r)
    va = jnp.concatenate([va_q, va_v], axis=1).astype(compute_dtype)

    ub_q = (params["U_q"] @ params["b_q"]).T                        # (r, D)
    ub_v = (params["U_v"] @ params["b_v"]).T                        # (r, D)
    ub = jnp.zeros((2 * r, 3 * D), jnp.float32)
    ub = ub.at[:r, :D].set(ub_q).at[r:, 2 * D:].set(ub_v)
    return w_t, bias, va, ub.astype(compute_dtype)


# ---------------------------------------------------------------------------
# VMEM sizing helpers
# ---------------------------------------------------------------------------
def _physical_vmem_bytes():
    try:
        return int(pltpu.get_tpu_info().vmem_capacity_bytes)
    except Exception:
        return 64 * 2 ** 20          # conservative fallback (v7x per-TC)


def _estimate_vmem(D, r2, tm, tn, c_bytes, o_bytes, *, resident_weights):
    """Resident VMEM estimate incl. the in-kernel f32 intermediates."""
    nbuf_w = 1 if resident_weights else 2
    need = 0
    need += 2 * tm * D * c_bytes              # x tile (double-buffered)
    need += nbuf_w * D * tn * c_bytes         # Wqkv^T column slab
    need += nbuf_w * tn * 4                   # bias columns (f32)
    need += 1 * D * r2 * c_bytes              # VA (always single-buffered)
    need += nbuf_w * r2 * tn * c_bytes        # UB column slab
    need += 2 * tm * tn * o_bytes             # out tile (double-buffered)
    need += 3 * tm * tn * 4 + tm * r2 * 4     # f32 base/upd/bias-bcast + low
    return need


def _spec(block_shape, index_map, *, single_buffer=False):
    """BlockSpec, optionally single-buffered for constant-index residents."""
    if single_buffer:
        try:
            return pl.BlockSpec(block_shape, index_map,
                                pipeline_mode=pl.Buffered(1))
        except (TypeError, AttributeError):
            pass  # older jax without pipeline_mode / Buffered -> default 2 bufs
    return pl.BlockSpec(block_shape, index_map)


# ---------------------------------------------------------------------------
# Forward builder
# ---------------------------------------------------------------------------
def make_speclora_forward(params, *, tile_m=256, tile_n=None,
                          compute_dtype=jnp.bfloat16, out_dtype=None):
    """Fold the frozen weights once and return a jitted forward callable.

    x: (B, S, D)  ->  (B, S, 3*D) in `out_dtype` (defaults to compute_dtype).
    """
    if tile_m % 8:
        raise ValueError("tile_m must be a multiple of 8")
    out_dtype = compute_dtype if out_dtype is None else out_dtype

    w_t, bias, va, ub = fold_speclora_params(params, compute_dtype)
    D = w_t.shape[0]
    r2 = va.shape[1]
    c_bytes = jnp.dtype(compute_dtype).itemsize
    o_bytes = jnp.dtype(out_dtype).itemsize

    # Per-chip VMEM budget = physical capacity minus headroom for Mosaic
    # internal scratch (112 MiB on v5e/v6e, 48 MiB on v7x).
    budget = max(_physical_vmem_bytes() - 16 * 2 ** 20, 32 * 2 ** 20)

    # Column tile selection: keep the weights fully resident if they fit the
    # budget, otherwise tile the 3*D output columns (lane-aligned, /128).
    if tile_n is None:
        full = 3 * D
        candidates = [full]
        if D % 128 == 0:
            candidates += [c for c in range(full - 128, 0, -128) if full % c == 0]
        tile_n = candidates[-1]
        for cand in candidates:
            if _estimate_vmem(D, r2, tile_m, cand, c_bytes, o_bytes,
                              resident_weights=(cand == full)) <= 0.85 * budget:
                tile_n = cand
                break
    if (3 * D) % tile_n:
        raise ValueError("tile_n must divide 3*dim")
    n_col = (3 * D) // tile_n
    resident_weights = (n_col == 1)

    vmem_need = _estimate_vmem(D, r2, tile_m, tile_n, c_bytes, o_bytes,
                               resident_weights=resident_weights)
    vmem_limit = int(min(budget, max(2 * vmem_need, 32 * 2 ** 20)))

    def fwd(x):
        B, S, D_in = x.shape
        assert D_in == D, "input feature dim mismatch"
        N = B * S
        n_row = pl.cdiv(N, tile_m)
        Np = n_row * tile_m

        # Row-pad + cast; both fuse under the surrounding jit (no extra HBM
        # round trip of x before the kernel).
        x2 = x.reshape(N, D).astype(compute_dtype)
        if Np != N:
            x2 = jnp.pad(x2, ((0, Np - N), (0, 0)))

        out2 = pl.pallas_call(
            speclora_kernel,
            out_shape=jax.ShapeDtypeStruct((Np, 3 * D), out_dtype),
            grid_spec=pltpu.PrefetchScalarGridSpec(
                num_scalar_prefetch=0,
                grid=(n_row, n_col),
                in_specs=[
                    pl.BlockSpec((tile_m, D), lambda i, j: (i, 0)),     # x rows
                    _spec((D, tile_n), lambda i, j: (0, j),             # Wqkv^T
                          single_buffer=resident_weights),
                    _spec((1, tile_n), lambda i, j: (0, j),             # bias
                          single_buffer=resident_weights),
                    _spec((D, r2), lambda i, j: (0, 0),                 # VA
                          single_buffer=True),
                    _spec((r2, tile_n), lambda i, j: (0, j),            # UB
                          single_buffer=resident_weights),
                ],
                out_specs=pl.BlockSpec((tile_m, tile_n), lambda i, j: (i, j)),
            ),
            compiler_params=pltpu.CompilerParams(
                dimension_semantics=("parallel", "parallel"),
                vmem_limit_bytes=vmem_limit),
        )(x2, w_t, bias, va, ub)

        return out2[:N].reshape(B, S, 3 * D)

    return jax.jit(fwd)


# ---------------------------------------------------------------------------
# Parameter construction & pure-JAX reference (host glue for the demo)
# ---------------------------------------------------------------------------
def make_params(key, dim, rank):
    """Deterministic parameter setup mirroring SpecLoRA.__init__."""
    k_w, k_b, k_aq, k_av, k_bq, k_bv = jax.random.split(key, 6)

    bound = 1.0 / math.sqrt(dim)
    wqkv = jax.random.uniform(k_w, (3 * dim, dim), jnp.float32, -bound, bound)
    bqkv = jax.random.uniform(k_b, (3 * dim,), jnp.float32, -bound, bound)

    # Spectral bases from the SVD of the frozen Q and V blocks (init-time, host).
    q_weight = np.asarray(wqkv[:dim, :])
    v_weight = np.asarray(wqkv[2 * dim:, :])
    U_q, _, Vh_q = np.linalg.svd(q_weight, full_matrices=False)
    U_v, _, Vh_v = np.linalg.svd(v_weight, full_matrices=False)

    a_bound = 1.0 / math.sqrt(dim)
    a_q = jax.random.uniform(k_aq, (rank, dim), jnp.float32, -a_bound, a_bound)
    a_v = jax.random.uniform(k_av, (rank, dim), jnp.float32, -a_bound, a_bound)
    # NOTE: the PyTorch module zero-inits linear_b_*; small deterministic values
    # are used here so the spectral-LoRA path actually contributes.
    b_q = 0.01 * jax.random.uniform(k_bq, (dim, rank), jnp.float32, -1.0, 1.0)
    b_v = 0.01 * jax.random.uniform(k_bv, (dim, rank), jnp.float32, -1.0, 1.0)

    return dict(wqkv=wqkv, bqkv=bqkv,
                U_q=jnp.asarray(U_q, jnp.float32), V_q=jnp.asarray(Vh_q.T, jnp.float32),
                U_v=jnp.asarray(U_v, jnp.float32), V_v=jnp.asarray(Vh_v.T, jnp.float32),
                a_q=a_q, b_q=b_q, a_v=a_v, b_v=b_v)


def speclora_reference(x, p):
    """Pure-JAX reference matching the PyTorch forward (un-folded, f32)."""
    B, S, D = x.shape
    mm = lambda a, b: jnp.dot(a, b, precision=jax.lax.Precision.HIGHEST)
    x2 = x.reshape(-1, D)
    qkv = mm(x2, p["wqkv"].T) + p["bqkv"]
    q_upd = mm(mm(mm(mm(x2, p["V_q"]), p["a_q"].T), p["b_q"].T), p["U_q"].T)
    v_upd = mm(mm(mm(mm(x2, p["V_v"]), p["a_v"].T), p["b_v"].T), p["U_v"].T)
    q_new = qkv[:, :D] + q_upd
    k = qkv[:, D:2 * D]
    v_new = qkv[:, 2 * D:] + v_upd
    return jnp.concatenate([q_new, k, v_new], axis=-1).reshape(B, S, 3 * D)


# ---------------------------------------------------------------------------
# Demo / correctness checks
# ---------------------------------------------------------------------------
if __name__ == "__main__":
    batch, seq, dim, rank = 2, 8, 128, 8   # D multiple of 128 -> lane-aligned tiles

    key = jax.random.PRNGKey(0)
    k_params, k_x, k_x2 = jax.random.split(key, 3)
    params = make_params(k_params, dim, rank)

    x = jax.random.normal(k_x, (batch, seq, dim), jnp.float32)
    ref = speclora_reference(x, params)

    # Case 1: bf16 compute + bf16 output, fully-resident single-buffered weights,
    # row padding 16 -> 128 tokens.
    fwd_bf16 = make_speclora_forward(params, tile_m=128, compute_dtype=jnp.bfloat16)
    out_bf16 = jax.block_until_ready(fwd_bf16(x))
    assert out_bf16.shape == (batch, seq, 3 * dim)
    assert out_bf16.dtype == jnp.bfloat16
    assert jnp.allclose(out_bf16.astype(jnp.float32), ref, atol=4e-2, rtol=4e-2), \
        "bf16 mismatch vs reference"

    # Case 2: f32 compute (+ f32 output) for a tight numerical check.
    fwd_f32 = make_speclora_forward(params, tile_m=128, compute_dtype=jnp.float32)
    out_f32 = jax.block_until_ready(fwd_f32(x))
    assert jnp.allclose(out_f32, ref, atol=1e-4, rtol=1e-4), "f32 mismatch vs reference"

    # Case 3: multi-tile grid with row padding AND explicit column tiling
    # (N=100 tokens -> 2 row tiles of 64; 3*D=384 -> 3 column tiles of 128).
    xb = jax.random.normal(k_x2, (2, 50, dim), jnp.float32)
    refb = speclora_reference(xb, params)
    fwd_ct = make_speclora_forward(params, tile_m=64, tile_n=128,
                                   compute_dtype=jnp.bfloat16)
    outb = jax.block_until_ready(fwd_ct(xb))
    assert outb.shape == (2, 50, 3 * dim)
    assert jnp.allclose(outb.astype(jnp.float32), refb, atol=4e-2, rtol=4e-2), \
        "column-tiled mismatch vs reference"

    print("KERNEL_OK")
</pallas_src>

<mosaic_0001>
module attributes {stable_mosaic.version = 11 : i64} {
  func.func @speclora_kernel(%arg0: i32, %arg1: i32, %arg2: memref<128x128xbf16, #tpu.memory_space<vmem>>, %arg3: memref<128x384xbf16, #tpu.memory_space<vmem>>, %arg4: memref<1x384xf32, #tpu.memory_space<vmem>>, %arg5: memref<128x16xbf16, #tpu.memory_space<vmem>>, %arg6: memref<16x384xbf16, #tpu.memory_space<vmem>>, %arg7: memref<128x384xbf16, #tpu.memory_space<vmem>>) attributes {dimension_semantics = [#tpu.dimension_semantics<parallel>, #tpu.dimension_semantics<parallel>], iteration_bounds = array<i64: 1, 1>, scalar_prefetch = 0 : i64, scratch_operands = 0 : i64, tpu.core_type = #tpu.core_type<tc>, window_params = [{transform_indices = @transform_0, window_bounds = array<i64: 128, 128>}, {pipeline_mode = #tpu.pipeline_mode<synchronous>, transform_indices = @transform_1, window_bounds = array<i64: 128, 384>}, {pipeline_mode = #tpu.pipeline_mode<synchronous>, transform_indices = @transform_2, window_bounds = array<i64: 1, 384>}, {pipeline_mode = #tpu.pipeline_mode<synchronous>, transform_indices = @transform_3, window_bounds = array<i64: 128, 16>}, {pipeline_mode = #tpu.pipeline_mode<synchronous>, transform_indices = @transform_4, window_bounds = array<i64: 16, 384>}, {transform_indices = @transform_5, window_bounds = array<i64: 128, 384>}]} {
    %c0 = arith.constant 0 : index
    %c0_0 = arith.constant 0 : index
    %0 = vector.load %arg2[%c0, %c0_0] : memref<128x128xbf16, #tpu.memory_space<vmem>>, vector<128x128xbf16>
    %c0_1 = arith.constant 0 : index
    %c0_2 = arith.constant 0 : index
    %1 = vector.load %arg3[%c0_1, %c0_2] : memref<128x384xbf16, #tpu.memory_space<vmem>>, vector<128x384xbf16>
    %cst = arith.constant dense<0.000000e+00> : vector<128x384xf32>
    %2 = tpu.matmul %0, %1, %cst {dimension_numbers = #tpu.dot_dimension_numbers<[1], [0], [0], [1], [0, 0, 1, 1], [], []>} : vector<128x128xbf16>, vector<128x384xbf16>, vector<128x384xf32> -> vector<128x384xf32>
    %c0_3 = arith.constant 0 : index
    %c0_4 = arith.constant 0 : index
    %3 = vector.load %arg5[%c0_3, %c0_4] : memref<128x16xbf16, #tpu.memory_space<vmem>>, vector<128x16xbf16>
    %cst_5 = arith.constant dense<0.000000e+00> : vector<128x16xf32>
    %4 = tpu.matmul %0, %3, %cst_5 {dimension_numbers = #tpu.dot_dimension_numbers<[1], [0], [0], [1], [0, 0, 1, 1], [], []>} : vector<128x128xbf16>, vector<128x16xbf16>, vector<128x16xf32> -> vector<128x16xf32>
    %5 = arith.truncf %4 : vector<128x16xf32> to vector<128x16xbf16>
    %c0_6 = arith.constant 0 : index
    %c0_7 = arith.constant 0 : index
    %6 = vector.load %arg6[%c0_6, %c0_7] : memref<16x384xbf16, #tpu.memory_space<vmem>>, vector<16x384xbf16>
    %cst_8 = arith.constant dense<0.000000e+00> : vector<128x384xf32>
    %7 = tpu.matmul %5, %6, %cst_8 {dimension_numbers = #tpu.dot_dimension_numbers<[1], [0], [0], [1], [0, 0, 1, 1], [], []>} : vector<128x16xbf16>, vector<16x384xbf16>, vector<128x384xf32> -> vector<128x384xf32>
    %c0_9 = arith.constant 0 : index
    %c0_10 = arith.constant 0 : index
    %8 = vector.load %arg4[%c0_9, %c0_10] : memref<1x384xf32, #tpu.memory_space<vmem>>, vector<1x384xf32>
    %9 = vector.broadcast %8 : vector<1x384xf32> to vector<128x384xf32>
    %10 = arith.addf %2, %9 : vector<128x384xf32>
    %11 = arith.addf %10, %7 : vector<128x384xf32>
    %12 = arith.truncf %11 : vector<128x384xf32> to vector<128x384xbf16>
    %c0_11 = arith.constant 0 : index
    %c0_12 = arith.constant 0 : index
    %13 = vector.load %arg7[%c0_11, %c0_12] : memref<128x384xbf16, #tpu.memory_space<vmem>>, vector<128x384xbf16>
    tpu.vector_store %arg7[%c0_11, %c0_12], %12 {strides = array<i32>} : memref<128x384xbf16, #tpu.memory_space<vmem>>, vector<128x384xbf16>,
    return
  }
  func.func @transform_0(%arg0: i32, %arg1: i32) -> (i32, i32) {
    %c0_i32 = arith.constant 0 : i32
    %c0_i32_0 = arith.constant 0 : i32
    return %arg0, %c0_i32 : i32, i32
  }
  func.func @transform_1(%arg0: i32, %arg1: i32) -> (i32, i32) {
    %c0_i32 = arith.constant 0 : i32
    %c0_i32_0 = arith.constant 0 : i32
    return %c0_i32, %arg1 : i32, i32
  }
  func.func @transform_2(%arg0: i32, %arg1: i32) -> (i32, i32) {
    %c0_i32 = arith.constant 0 : i32
    %c0_i32_0 = arith.constant 0 : i32
    return %c0_i32, %arg1 : i32, i32
  }
  func.func @transform_3(%arg0: i32, %arg1: i32) -> (i32, i32) {
    %c0_i32 = arith.constant 0 : i32
    %c0_i32_0 = arith.constant 0 : i32
    %c0_i32_1 = arith.constant 0 : i32
    return %c0_i32, %c0_i32_0 : i32, i32
  }
  func.func @transform_4(%arg0: i32, %arg1: i32) -> (i32, i32) {
    %c0_i32 = arith.constant 0 : i32
    %c0_i32_0 = arith.constant 0 : i32
    return %c0_i32, %arg1 : i32, i32
  }
  func.func @transform_5(%arg0: i32, %arg1: i32) -> (i32, i32) {
    %c0_i32 = arith.constant 0 : i32
    return %arg0, %arg1 : i32, i32
  }
}

</mosaic_0001>

<bundles_post_ra>
// kernel: fwd.1
= control target key start
LH: loop header
LB: loop body
LE: loop exit
PB: predicated region body
PF: predicated region fallthrough
CT: control target
= control target key end

     0   :  { %v1535_v19 = vmov 0   ;;  %vm306_vm0 = vcmask 130048   ;;  %s1912_s3 = inlined_call_operand.vmem [shape: bf16[128,16], index: 3, kind: input, shape index: {}]   ;;  %s1913_s0 = inlined_call_operand.vmem [shape: bf16[128,128], index: 0, kind: input, shape index: {}]   ;;  %s1914_s4 = inlined_call_operand.vmem [shape: bf16[16,384], index: 4, kind: input, shape index: {}]   ;;  %s1915_s1 = inlined_call_operand.vmem [shape: bf16[128,384], index: 1, kind: input, shape index: {}]   ;;  %s1916_s2 = inlined_call_operand.vmem [shape: f32[1,384], index: 2, kind: input, shape index: {}]   ;;  %s1917_s5 = inlined_call_operand.vmem [shape: bf16[128,384], index: 5, kind: output, shape index: {}]  }
   0x1   :  { %v1483_v0 = vld [vmem:[%s1912_s3] sm:$0xff]   ;;  %v1484_v1 = vld [vmem:[%s1912_s3 + $0x8] sm:$0xff]   ;;  %v1485_v2 = vld [vmem:[%s1912_s3 + $0x10] sm:$0xff]   ;;  %363 = vmatprep.mubr.bf16.mxu1 %v1535_v19 }
   0x2   :  { %1304 = vmatprep.subr.bf16.mxu0 %v1483_v0  ;;  %v1486_v3 = vld [vmem:[%s1912_s3 + $0x18] sm:$0xff]   ;;  %v1581_v4 = vld [vmem:[%s1913_s0] sm:$0xff]   ;;  %v1488_v6 = vld [vmem:[%s1912_s3 + $0x28] sm:$0xff]  }
   0x3   :  { %1305 = vmatpush3.bf16.msra.mxu0 %v1483_v0  ;;  %1320 = vmatprep.mubr.bf16.mxu0 %v1581_v4  ;;  %v1487_v5 = vld [vmem:[%s1912_s3 + $0x20] sm:$0xff]   ;;  %v1489_v7 = vld [vmem:[%s1912_s3 + $0x30] sm:$0xff]   ;;  %v1490_v8 = vld [vmem:[%s1912_s3 + $0x38] sm:$0xff]  }
   0x4   :  { %1306 = vmatprep.subr.bf16.mxu0 %v1484_v1  ;;  %v1599_v9 = vld [vmem:[%s1913_s0 + $0x8] sm:$0xff]   ;;  %v1604_v10 = vld [vmem:[%s1913_s0 + $0x10] sm:$0xff]   ;;  %v1611_v11 = vld [vmem:[%s1913_s0 + $0x18] sm:$0xff]  }
   0x5   :  { %v1616_v12 = vld [vmem:[%s1913_s0 + $0x20] sm:$0xff]   ;;  %v1623_v13 = vld [vmem:[%s1913_s0 + $0x28] sm:$0xff]   ;;  %v1628_v14 = vld [vmem:[%s1913_s0 + $0x30] sm:$0xff]  }
   0x6   :  { %v1635_v15 = vld [vmem:[%s1913_s0 + $0x38] sm:$0xff]   ;;  %v1499_v16 = vld [vmem:[%s1914_s4 + $0x4] ss:$12 sps:$4 sm:$0xff]   ;;  %v1501_v17 = vld [vmem:[%s1914_s4] ss:$12 sps:$4 sm:$0xff]  }
   0x7   :  { %1307 = vmatpush3.bf16.msra.mxu0 %v1484_v1  ;;  %331 = vmatprep.subr.bf16.mxu1 %v1499_v16  ;;  %v1502_v18 = vld [vmem:[%s1914_s4 + $0x8] ss:$12 sps:$4 sm:$0xff]   ;;  %v1505_v20 = vld [vmem:[%s1915_s1 + $0x4] ss:$12 sps:$4 sm:$0xff]   ;;  %v1503_v27 = vld [vmem:[%s1915_s1] ss:$12 sps:$4 sm:$0xff]  }
   0x8   :  { %1308 = vmatprep.subr.bf16.mxu0 %v1485_v2  ;;  %332 = vmatpush1.bf16.msra.mxu1 %v1501_v17  ;;  %v1506_v21 = vld [vmem:[%s1915_s1 + $0x8] ss:$12 sps:$4 sm:$0xff]   ;;  %v1507_v29 = vld [vmem:[%s1915_s1 + $0x20] ss:$12 sps:$4 sm:$0xff]   ;;  %v1508_v31 = vld [vmem:[%s1915_s1 + $0x18] ss:$12 sps:$4 sm:$0xff]  }
   0x9   :  { %686 = vmatprep.subr.bf16.mxu1 %v1505_v20  ;;  %v1510_v30 = vld [vmem:[%s1915_s1 + $0x1c] ss:$12 sps:$4 sm:$0xff]   ;;  %v1515_v33 = vld [vmem:[%s1915_s1 + $0x34] ss:$12 sps:$4 sm:$0xff]   ;;  %v1511_v35 = vld [vmem:[%s1915_s1 + $0x38] ss:$12 sps:$4 sm:$0xff]  }
   0xa   :  { %v1513_v40 = vld [vmem:[%s1915_s1 + $0x30] ss:$12 sps:$4 sm:$0xff]   ;;  %v1520_v42 = vld [vmem:[%s1915_s1 + $0x4c] ss:$12 sps:$4 sm:$0xff]   ;;  %v1518_v44 = vld [vmem:[%s1915_s1 + $0x48] ss:$12 sps:$4 sm:$0xff]  }
   0xb   :  { %1309 = vmatpush3.bf16.msra.mxu0 %v1485_v2  ;;  %v1512_v41 = vld [vmem:[%s1915_s1 + $0x50] ss:$12 sps:$4 sm:$0xff]   ;;  %v1516_v46 = vld [vmem:[%s1915_s1 + $0x68] ss:$12 sps:$4 sm:$0xff]   ;;  %v1523_v52 = vld [vmem:[%s1915_s1 + $0x60] ss:$12 sps:$4 sm:$0xff]  }
   0xc   :  { %1310 = vmatprep.subr.bf16.mxu0 %v1486_v3  ;;  %v1525_v47 = vld [vmem:[%s1915_s1 + $0x64] ss:$12 sps:$4 sm:$0xff]   ;;  %v1517_v53 = vld [vmem:[%s1915_s1 + $0x80] ss:$12 sps:$4 sm:$0xff]   ;;  %v1528_v54 = vld [vmem:[%s1915_s1 + $0x7c] ss:$12 sps:$4 sm:$0xff]  }
   0xd   :  { %v1526_v56 = vld [vmem:[%s1915_s1 + $0x78] ss:$12 sps:$4 sm:$0xff]   ;;  %v1531_v59 = vld [vmem:[%s1915_s1 + $0x94] ss:$12 sps:$4 sm:$0xff]   ;;  %v1522_v0 = vld [vmem:[%s1915_s1 + $0xb0] ss:$12 sps:$4 sm:$0xff]  }
   0xe   :  { %v1521_v58 = vld [vmem:[%s1915_s1 + $0x98] ss:$12 sps:$4 sm:$0xff]   ;;  %v1529_v1 = vld [vmem:[%s1915_s1 + $0x90] ss:$12 sps:$4 sm:$0xff]  }
   0xf   :  { %1311 = vmatpush3.bf16.msra.mxu0 %v1486_v3  ;;  %v1534_v2 = vld [vmem:[%s1915_s1 + $0xac] ss:$12 sps:$4 sm:$0xff]   ;;  %v1532_v3 = vld [vmem:[%s1915_s1 + $0xa8] ss:$12 sps:$4 sm:$0xff]  }
  0x10   :  { %1312 = vmatprep.subr.bf16.mxu0 %v1487_v5 }
  0x13   :  { %1313 = vmatpush3.bf16.msra.mxu0 %v1487_v5 }
  0x14   :  { %1314 = vmatprep.subr.bf16.mxu0 %v1488_v6 }
  0x17   :  { %1315 = vmatpush3.bf16.msra.mxu0 %v1488_v6 }
  0x18   :  { %1316 = vmatprep.subr.bf16.mxu0 %v1489_v7 }
  0x1b   :  { %1317 = vmatpush3.bf16.msra.mxu0 %v1489_v7  ;;  %v1773_v7 = vld [vmem:[%s1916_s2] sm:$0x7] }
  0x1c   :  { %1318 = vmatprep.subr.bf16.mxu0 %v1490_v8 }
  0x1f   :  { %1319 = vmatpush3.bf16.msra.mxu0 %v1490_v8 }
  0x20   :  { %1336 = vmatprep.subr.bf16.mxu0 %v1502_v18 }
  0x22   :  { %1321 = vmatmul.mubr.bf16.vlgmr.msra.gmra.mrb[0].mxu0 %v1599_v9 }
  0x23   :  { %1324 = vmatprep.mubr.bf16.mxu0 %v1604_v10  ;;  %1337 = vmatpush3.bf16.msra.mxu0 %v1502_v18 }
  0x24   :  { %1354 = vmatprep.subr.bf16.mxu0 %v1506_v21 }
  0x2a   :  { %1325 = vmatmul.mubr.bf16.gmra.mrb[4].mxu0 %v1611_v11 }
  0x2b   :  { %1328 = vmatprep.mubr.bf16.mxu0 %v1616_v12 }
  0x32   :  { %1329 = vmatmul.mubr.bf16.gmra.mrb[8].mxu0 %v1623_v13 }
  0x33   :  { %1332 = vmatprep.mubr.bf16.mxu0 %v1628_v14 }
  0x3a   :  { %1333 = vmatmul.mubr.bf16.gmra.mrb[12].mxu0 %v1635_v15 }
  0xf5   :  { %v1322_v22 = vpop.f32.mrb[0].mxu0 }
  0xf6   :  { %v215_v23 = vpop.f32.mrb[1].mxu0 }
  0xf7   :  { %v1323_v24 = vpop.f32.mrb[2].mxu0 }
  0xf8   :  { %v279_v25 = vpack.c.bf16 %v1323_v24, %v1322_v22  ;;  %v218_v26 = vpop.f32.mrb[3].mxu0 }
  0xf9   :  { %v278_v28 = vpack.c.bf16 %v218_v26, %v215_v23 }
  0xfb   :  { %1159 = vmatmul.mubr.msk.bf16.vlgmr.msra.gmra.mrb[0].mxu1 %vm306_vm0, %v278_v28  ;;  %1338 = vmatprep.mubr.msk.bf16.mxu0 %vm306_vm0, %v278_v28 }
  0xfc   :  { %687 = vmatpush1.bf16.msra.mxu1 %v1503_v27  ;;  %1339 = vmatmul.mubr.msk.bf16.vlgmr.msra.gmra.mrb[16].mxu0 %vm306_vm0, %v279_v25 }
  0xfd   :  { %v1326_v32 = vpop.f32.mrb[4].mxu0  ;;  %1355 = vmatpush3.bf16.msra.mxu0 %v1506_v21  ;;  %373 = vmatprep.mubr.bf16.mxu1 %v1535_v19 }
  0xfe   :  { %v231_v34 = vpop.f32.mrb[5].mxu0  ;;  %1356 = vmatprep.subr.bf16.mxu0 %v1507_v29  ;;  %688 = vmatprep.subr.bf16.mxu1 %v1510_v30 }
  0xff   :  { %v1327_v36 = vpop.f32.mrb[6].mxu0 }
 0x100   :  { %v281_v37 = vpack.c.bf16 %v1327_v36, %v1326_v32  ;;  %v234_v38 = vpop.f32.mrb[7].mxu0  ;;  %689 = vmatpush1.bf16.msra.mxu1 %v1508_v31 }
 0x101   :  { %v280_v39 = vpack.c.bf16 %v234_v38, %v231_v34  ;;  %1357 = vmatpush3.bf16.msra.mxu0 %v1507_v29  ;;  %690 = vmatprep.subr.bf16.mxu1 %v1515_v33 }
 0x102   :  { %1358 = vmatprep.subr.bf16.mxu0 %v1511_v35 }
 0x103   :  { %1160 = vmatmul.mubr.msk.bf16.gmra.mrb[4].mxu1 %vm306_vm0, %v279_v25  ;;  %1342 = vmatprep.mubr.msk.bf16.mxu0 %vm306_vm0, %v280_v39 }
 0x104   :  { %1343 = vmatmul.mubr.msk.bf16.gmra.mrb[20].mxu0 %vm306_vm0, %v281_v37  ;;  %383 = vmatprep.mubr.bf16.mxu1 %v1535_v19 }
 0x105   :  { %v1330_v43 = vpop.f32.mrb[8].mxu0  ;;  %1359 = vmatpush3.bf16.msra.mxu0 %v1511_v35  ;;  %691 = vmatpush1.bf16.msra.mxu1 %v1513_v40 }
 0x106   :  { %v247_v45 = vpop.f32.mrb[9].mxu0  ;;  %1360 = vmatprep.subr.bf16.mxu0 %v1512_v41  ;;  %692 = vmatprep.subr.bf16.mxu1 %v1520_v42 }
 0x107   :  { %v1331_v48 = vpop.f32.mrb[10].mxu0 }
 0x108   :  { %v283_v49 = vpack.c.bf16 %v1331_v48, %v1330_v43  ;;  %v250_v50 = vpop.f32.mrb[11].mxu0 }
 0x109   :  { %v282_v51 = vpack.c.bf16 %v250_v50, %v247_v45  ;;  %1361 = vmatpush3.bf16.msra.mxu0 %v1512_v41  ;;  %693 = vmatpush1.bf16.msra.mxu1 %v1518_v44 }
 0x10a   :  { %1362 = vmatprep.subr.bf16.mxu0 %v1516_v46  ;;  %694 = vmatprep.subr.bf16.mxu1 %v1525_v47 }
 0x10b   :  { %1161 = vmatmul.mubr.msk.bf16.gmra.mrb[8].mxu1 %vm306_vm0, %v280_v39  ;;  %1346 = vmatprep.mubr.msk.bf16.mxu0 %vm306_vm0, %v282_v51 }
 0x10c   :  { %1347 = vmatmul.mubr.msk.bf16.gmra.mrb[24].mxu0 %vm306_vm0, %v283_v49  ;;  %393 = vmatprep.mubr.bf16.mxu1 %v1535_v19 }
 0x10d   :  { %v1334_v55 = vpop.f32.mrb[12].mxu0  ;;  %1363 = vmatpush3.bf16.msra.mxu0 %v1516_v46  ;;  %695 = vmatpush1.bf16.msra.mxu1 %v1523_v52 }
 0x10e   :  { %v263_v57 = vpop.f32.mrb[13].mxu0  ;;  %1364 = vmatprep.subr.bf16.mxu0 %v1517_v53  ;;  %696 = vmatprep.subr.bf16.mxu1 %v1528_v54 }
 0x10f   :  { %v1335_v60 = vpop.f32.mrb[14].mxu0 }
 0x110   :  { %v285_v61 = vpack.c.bf16 %v1335_v60, %v1334_v55  ;;  %v266_v62 = vpop.f32.mrb[15].mxu0 }
 0x111   :  { %v284_v63 = vpack.c.bf16 %v266_v62, %v263_v57  ;;  %1365 = vmatpush3.bf16.msra.mxu0 %v1517_v53  ;;  %697 = vmatpush1.bf16.msra.mxu1 %v1526_v56 }
 0x112   :  { %1366 = vmatprep.subr.bf16.mxu0 %v1521_v58  ;;  %698 = vmatprep.subr.bf16.mxu1 %v1531_v59 }
 0x113   :  { %1162 = vmatmul.mubr.msk.bf16.gmra.mrb[12].mxu1 %vm306_vm0, %v281_v37  ;;  %1350 = vmatprep.mubr.msk.bf16.mxu0 %vm306_vm0, %v284_v63 }
 0x114   :  { %1351 = vmatmul.mubr.msk.bf16.gmra.mrb[28].mxu0 %vm306_vm0, %v285_v61  ;;  %403 = vmatprep.mubr.bf16.mxu1 %v1535_v19 }
 0x115   :  { %1367 = vmatpush3.bf16.msra.mxu0 %v1521_v58  ;;  %1370 = vmatprep.mubr.bf16.mxu0 %v1581_v4 }
 0x116   :  { %1368 = vmatprep.subr.bf16.mxu0 %v1522_v0  ;;  %699 = vmatpush1.bf16.msra.mxu1 %v1529_v1 }
 0x117   :  { %700 = vmatprep.subr.bf16.mxu1 %v1534_v2 }
 0x119   :  { %1369 = vmatpush3.bf16.msra.mxu0 %v1522_v0 }
 0x11a   :  { %701 = vmatpush1.bf16.msra.mxu1 %v1532_v3 }
 0x11b   :  { %1163 = vmatmul.mubr.msk.bf16.gmra.mrb[16].mxu1 %vm306_vm0, %v282_v51 }
 0x11c   :  { %1371 = vmatmul.mubr.bf16.vlgmr.msra.gmra.mrb[16].mxu0 %v1599_v9  ;;  %413 = vmatprep.mubr.bf16.mxu1 %v1535_v19 }
 0x11d   :  { %1374 = vmatprep.mubr.bf16.mxu0 %v1604_v10 }
 0x123   :  { %1164 = vmatmul.mubr.msk.bf16.gmra.mrb[20].mxu1 %vm306_vm0, %v283_v49 }
 0x124   :  { %1375 = vmatmul.mubr.bf16.gmra.mrb[20].mxu0 %v1611_v11  ;;  %423 = vmatprep.mubr.bf16.mxu1 %v1535_v19 }
 0x125   :  { %1378 = vmatprep.mubr.bf16.mxu0 %v1616_v12 }
 0x12b   :  { %1165 = vmatmul.mubr.msk.bf16.gmra.mrb[24].mxu1 %vm306_vm0, %v284_v63 }
 0x12c   :  { %1379 = vmatmul.mubr.bf16.gmra.mrb[24].mxu0 %v1623_v13  ;;  %433 = vmatprep.mubr.bf16.mxu1 %v1535_v19 }
 0x12d   :  { %1382 = vmatprep.mubr.bf16.mxu0 %v1628_v14 }
 0x133   :  { %1166 = vmatmul.mubr.msk.bf16.gmra.mrb[28].mxu1 %vm306_vm0, %v285_v61 }
 0x134   :  { %1383 = vmatmul.mubr.bf16.gmra.mrb[28].mxu0 %v1635_v15  ;;  %718 = vmatprep.mubr.bf16.mxu1 %v1535_v19 }
 0x13b   :  { %719 = vmatmul.mubr.bf16.vlgmr.msra.gmra.mrb[0].mxu1 %v1581_v4  ;;  %v543_v4 = vlaneseq }
 0x13c   :  { %728 = vmatprep.mubr.bf16.mxu1 %v1535_v19 }
 0x13d   :  { %v1767_v5 = vshrl.u32 %v543_v4, 7 }
 0x13f   :  { %v553_v6 = vsub.s32 2, %v1767_v5  ;;  %v545_v46 = vsub.s32 0, %v1767_v5  ;;  %v549_v49 = vsub.s32 1, %v1767_v5 }
 0x141   :  { %v554_v8 = vrot.slane %v1773_v7, %v553_v6  ;;  %v1815_v57 = vrot.slane %v1773_v7, %v545_v46  ;;  %v1821_v59 = vrot.slane %v1773_v7, %v549_v49 }
 0x143   :  { %729 = vmatmul.mubr.bf16.gmra.mrb[4].mxu1 %v1599_v9 }
 0x144   :  { %738 = vmatprep.mubr.bf16.mxu1 %v1535_v19 }
 0x14b   :  { %739 = vmatmul.mubr.bf16.gmra.mrb[8].mxu1 %v1604_v10 }
 0x14c   :  { %748 = vmatprep.mubr.bf16.mxu1 %v1535_v19 }
 0x153   :  { %749 = vmatmul.mubr.bf16.gmra.mrb[12].mxu1 %v1611_v11 }
 0x154   :  { %758 = vmatprep.mubr.bf16.mxu1 %v1535_v19 }
 0x15b   :  { %759 = vmatmul.mubr.bf16.gmra.mrb[16].mxu1 %v1616_v12 }
 0x15c   :  { %768 = vmatprep.mubr.bf16.mxu1 %v1535_v19 }
 0x163   :  { %769 = vmatmul.mubr.bf16.gmra.mrb[20].mxu1 %v1623_v13 }
 0x164   :  { %778 = vmatprep.mubr.bf16.mxu1 %v1535_v19 }
 0x16b   :  { %779 = vmatmul.mubr.bf16.gmra.mrb[24].mxu1 %v1628_v14 }
 0x16c   :  { %788 = vmatprep.mubr.bf16.mxu1 %v1535_v19 }
 0x173   :  { %789 = vmatmul.mubr.bf16.gmra.mrb[28].mxu1 %v1635_v15 }
 0x1ef   :  { %v1372_v9 = vpop.f32.mrb[16].mxu0 }
 0x1f0   :  { %v842_v10 = vadd.f32 %v1372_v9, %v554_v8  ;;  %v833_v11 = vpop.f32.mrb[17].mxu0 }
 0x1f1   :  { %v834_v12 = vadd.f32 %v833_v11, %v554_v8  ;;  %v1373_v13 = vpop.f32.mrb[18].mxu0 }
 0x1f2   :  { %v1236_v14 = vpack.c.bf16 %v842_v10, %v842_v10  ;;  %v845_v16 = vadd.f32 %v1373_v13, %v554_v8  ;;  %v836_v15 = vpop.f32.mrb[19].mxu0 }
 0x1f3   :  { %v1232_v17 = vpack.c.bf16 %v834_v12, %v834_v12  ;;  %v837_v18 = vadd.f32 %v836_v15, %v554_v8 }
 0x1f4   :  { %1109 = vst [vmem:[%s1917_s5 + $0x20] sm:$0xf] %v1236_v14  ;;  %v1238_v19 = vpack.c.bf16 %v845_v16, %v845_v16 }
 0x1f5   :  { %1105 = vst [vmem:[%s1917_s5 + $0x8] sm:$0xf] %v1232_v17  ;;  %v1234_v20 = vpack.c.bf16 %v837_v18, %v837_v18 }
 0x1f6   :  { %1111 = vst [vmem:[%s1917_s5 + $0x2c] sm:$0xf] %v1238_v19 }
 0x1f7   :  { %1107 = vst [vmem:[%s1917_s5 + $0x14] sm:$0xf] %v1234_v20  ;;  %v1376_v21 = vpop.f32.mrb[20].mxu0 }
 0x1f8   :  { %v858_v22 = vadd.f32 %v1376_v21, %v554_v8  ;;  %v849_v23 = vpop.f32.mrb[21].mxu0 }
 0x1f9   :  { %v850_v24 = vadd.f32 %v849_v23, %v554_v8  ;;  %v1377_v25 = vpop.f32.mrb[22].mxu0 }
 0x1fa   :  { %v1244_v26 = vpack.c.bf16 %v858_v22, %v858_v22  ;;  %v861_v27 = vadd.f32 %v1377_v25, %v554_v8  ;;  %v852_v28 = vpop.f32.mrb[23].mxu0 }
 0x1fb   :  { %v1240_v29 = vpack.c.bf16 %v850_v24, %v850_v24  ;;  %v853_v30 = vadd.f32 %v852_v28, %v554_v8 }
 0x1fc   :  { %1117 = vst [vmem:[%s1917_s5 + $0x50] sm:$0xf] %v1244_v26  ;;  %v1246_v31 = vpack.c.bf16 %v861_v27, %v861_v27 }
 0x1fd   :  { %1113 = vst [vmem:[%s1917_s5 + $0x38] sm:$0xf] %v1240_v29  ;;  %v1242_v32 = vpack.c.bf16 %v853_v30, %v853_v30 }
 0x1fe   :  { %1119 = vst [vmem:[%s1917_s5 + $0x5c] sm:$0xf] %v1246_v31 }
 0x1ff   :  { %1115 = vst [vmem:[%s1917_s5 + $0x44] sm:$0xf] %v1242_v32  ;;  %v1380_v33 = vpop.f32.mrb[24].mxu0 }
 0x200   :  { %v874_v34 = vadd.f32 %v1380_v33, %v554_v8  ;;  %v865_v35 = vpop.f32.mrb[25].mxu0 }
 0x201   :  { %v866_v36 = vadd.f32 %v865_v35, %v554_v8  ;;  %v1381_v37 = vpop.f32.mrb[26].mxu0 }
 0x202   :  { %v1252_v38 = vpack.c.bf16 %v874_v34, %v874_v34  ;;  %v877_v39 = vadd.f32 %v1381_v37, %v554_v8  ;;  %v868_v40 = vpop.f32.mrb[27].mxu0 }
 0x203   :  { %v1248_v41 = vpack.c.bf16 %v866_v36, %v866_v36  ;;  %v869_v42 = vadd.f32 %v868_v40, %v554_v8 }
 0x204   :  { %1125 = vst [vmem:[%s1917_s5 + $0x80] sm:$0xf] %v1252_v38  ;;  %v1254_v43 = vpack.c.bf16 %v877_v39, %v877_v39 }
 0x205   :  { %1121 = vst [vmem:[%s1917_s5 + $0x68] sm:$0xf] %v1248_v41  ;;  %v1250_v44 = vpack.c.bf16 %v869_v42, %v869_v42 }
 0x206   :  { %1127 = vst [vmem:[%s1917_s5 + $0x8c] sm:$0xf] %v1254_v43 }
 0x207   :  { %1123 = vst [vmem:[%s1917_s5 + $0x74] sm:$0xf] %v1250_v44  ;;  %v1384_v45 = vpop.f32.mrb[28].mxu0 }
 0x208   :  { %v890_v47 = vadd.f32 %v1384_v45, %v554_v8  ;;  %v881_v48 = vpop.f32.mrb[29].mxu0 }
 0x209   :  { %v882_v50 = vadd.f32 %v881_v48, %v554_v8  ;;  %v1385_v51 = vpop.f32.mrb[30].mxu0 }
 0x20a   :  { %v1260_v52 = vpack.c.bf16 %v890_v47, %v890_v47  ;;  %v893_v53 = vadd.f32 %v1385_v51, %v554_v8  ;;  %v884_v54 = vpop.f32.mrb[31].mxu0 }
 0x20b   :  { %v1256_v55 = vpack.c.bf16 %v882_v50, %v882_v50  ;;  %v885_v56 = vadd.f32 %v884_v54, %v554_v8 }
 0x20c   :  { %1133 = vst [vmem:[%s1917_s5 + $0xb0] sm:$0xf] %v1260_v52  ;;  %v1262_v58 = vpack.c.bf16 %v893_v53, %v893_v53 }
 0x20d   :  { %1129 = vst [vmem:[%s1917_s5 + $0x98] sm:$0xf] %v1256_v55  ;;  %v1258_v60 = vpack.c.bf16 %v885_v56, %v885_v56 }
 0x20e   :  { %1135 = vst [vmem:[%s1917_s5 + $0xbc] sm:$0xf] %v1262_v58  ;;  %v720_v61 = vpop.f32.mrb[0].mxu1 }
 0x20f   :  { %1131 = vst [vmem:[%s1917_s5 + $0xa4] sm:$0xf] %v1258_v60  ;;  %v721_v62 = vadd.f32 %v720_v61, %v1815_v57  ;;  %v722_v63 = vpop.f32.mrb[1].mxu1 }
 0x210   :  { %v723_v0 = vadd.f32 %v722_v63, %v1821_v59  ;;  %v724_v1 = vpop.f32.mrb[2].mxu1 }
 0x211   :  { %v725_v2 = vadd.f32 %v724_v1, %v1815_v57  ;;  %v726_v3 = vpop.f32.mrb[3].mxu1 }
 0x212   :  { %v1231_v4 = vpack.c.bf16 %v723_v0, %v721_v62  ;;  %v727_v5 = vadd.f32 %v726_v3, %v1821_v59 }
 0x214   :  { %1104 = vst [vmem:[%s1917_s5] sm:$0xff] %v1231_v4  ;;  %v1233_v6 = vpack.c.bf16 %v727_v5, %v725_v2 }
 0x216   :  { %1106 = vst [vmem:[%s1917_s5 + $0xc] sm:$0xff] %v1233_v6  ;;  %v730_v7 = vpop.f32.mrb[4].mxu1 }
 0x217   :  { %v731_v8 = vadd.f32 %v730_v7, %v1815_v57  ;;  %v732_v9 = vpop.f32.mrb[5].mxu1 }
 0x218   :  { %v733_v10 = vadd.f32 %v732_v9, %v1821_v59  ;;  %v734_v11 = vpop.f32.mrb[6].mxu1 }
 0x219   :  { %v735_v12 = vadd.f32 %v734_v11, %v1815_v57  ;;  %v736_v13 = vpop.f32.mrb[7].mxu1 }
 0x21a   :  { %v1235_v14 = vpack.c.bf16 %v733_v10, %v731_v8  ;;  %v737_v16 = vadd.f32 %v736_v13, %v1821_v59 }
 0x21c   :  { %1108 = vst [vmem:[%s1917_s5 + $0x18] sm:$0xff] %v1235_v14  ;;  %v1237_v15 = vpack.c.bf16 %v737_v16, %v735_v12 }
 0x21e   :  { %1110 = vst [vmem:[%s1917_s5 + $0x24] sm:$0xff] %v1237_v15  ;;  %v740_v17 = vpop.f32.mrb[8].mxu1 }
 0x21f   :  { %v741_v18 = vadd.f32 %v740_v17, %v1815_v57  ;;  %v742_v19 = vpop.f32.mrb[9].mxu1 }
 0x220   :  { %v743_v20 = vadd.f32 %v742_v19, %v1821_v59  ;;  %v744_v21 = vpop.f32.mrb[10].mxu1 }
 0x221   :  { %v745_v22 = vadd.f32 %v744_v21, %v1815_v57  ;;  %v746_v23 = vpop.f32.mrb[11].mxu1 }
 0x222   :  { %v1239_v24 = vpack.c.bf16 %v743_v20, %v741_v18  ;;  %v747_v25 = vadd.f32 %v746_v23, %v1821_v59 }
 0x224   :  { %1112 = vst [vmem:[%s1917_s5 + $0x30] sm:$0xff] %v1239_v24  ;;  %v1241_v26 = vpack.c.bf16 %v747_v25, %v745_v22 }
 0x226   :  { %1114 = vst [vmem:[%s1917_s5 + $0x3c] sm:$0xff] %v1241_v26  ;;  %v750_v27 = vpop.f32.mrb[12].mxu1 }
 0x227   :  { %v751_v28 = vadd.f32 %v750_v27, %v1815_v57  ;;  %v752_v29 = vpop.f32.mrb[13].mxu1 }
 0x228   :  { %v753_v30 = vadd.f32 %v752_v29, %v1821_v59  ;;  %v754_v31 = vpop.f32.mrb[14].mxu1 }
 0x229   :  { %v755_v32 = vadd.f32 %v754_v31, %v1815_v57  ;;  %v756_v33 = vpop.f32.mrb[15].mxu1 }
 0x22a   :  { %v1243_v34 = vpack.c.bf16 %v753_v30, %v751_v28  ;;  %v757_v35 = vadd.f32 %v756_v33, %v1821_v59 }
 0x22c   :  { %1116 = vst [vmem:[%s1917_s5 + $0x48] sm:$0xff] %v1243_v34  ;;  %v1245_v36 = vpack.c.bf16 %v757_v35, %v755_v32 }
 0x22e   :  { %1118 = vst [vmem:[%s1917_s5 + $0x54] sm:$0xff] %v1245_v36  ;;  %v760_v37 = vpop.f32.mrb[16].mxu1 }
 0x22f   :  { %v761_v38 = vadd.f32 %v760_v37, %v1815_v57  ;;  %v762_v39 = vpop.f32.mrb[17].mxu1 }
 0x230   :  { %v763_v40 = vadd.f32 %v762_v39, %v1821_v59  ;;  %v764_v41 = vpop.f32.mrb[18].mxu1 }
 0x231   :  { %v765_v42 = vadd.f32 %v764_v41, %v1815_v57  ;;  %v766_v43 = vpop.f32.mrb[19].mxu1 }
 0x232   :  { %v1247_v44 = vpack.c.bf16 %v763_v40, %v761_v38  ;;  %v767_v45 = vadd.f32 %v766_v43, %v1821_v59 }
 0x234   :  { %1120 = vst [vmem:[%s1917_s5 + $0x60] sm:$0xff] %v1247_v44  ;;  %v1249_v46 = vpack.c.bf16 %v767_v45, %v765_v42 }
 0x236   :  { %1122 = vst [vmem:[%s1917_s5 + $0x6c] sm:$0xff] %v1249_v46  ;;  %v770_v47 = vpop.f32.mrb[20].mxu1 }
 0x237   :  { %v771_v48 = vadd.f32 %v770_v47, %v1815_v57  ;;  %v772_v49 = vpop.f32.mrb[21].mxu1 }
 0x238   :  { %v773_v50 = vadd.f32 %v772_v49, %v1821_v59  ;;  %v774_v51 = vpop.f32.mrb[22].mxu1 }
 0x239   :  { %v775_v52 = vadd.f32 %v774_v51, %v1815_v57  ;;  %v776_v53 = vpop.f32.mrb[23].mxu1 }
 0x23a   :  { %v1251_v54 = vpack.c.bf16 %v773_v50, %v771_v48  ;;  %v777_v55 = vadd.f32 %v776_v53, %v1821_v59 }
 0x23c   :  { %1124 = vst [vmem:[%s1917_s5 + $0x78] sm:$0xff] %v1251_v54  ;;  %v1253_v56 = vpack.c.bf16 %v777_v55, %v775_v52 }
 0x23e   :  { %1126 = vst [vmem:[%s1917_s5 + $0x84] sm:$0xff] %v1253_v56  ;;  %v780_v58 = vpop.f32.mrb[24].mxu1 }
 0x23f   :  { %v781_v60 = vadd.f32 %v780_v58, %v1815_v57  ;;  %v782_v61 = vpop.f32.mrb[25].mxu1 }
 0x240   :  { %v783_v62 = vadd.f32 %v782_v61, %v1821_v59  ;;  %v784_v63 = vpop.f32.mrb[26].mxu1 }
 0x241   :  { %v785_v0 = vadd.f32 %v784_v63, %v1815_v57  ;;  %v786_v1 = vpop.f32.mrb[27].mxu1 }
 0x242   :  { %v1255_v2 = vpack.c.bf16 %v783_v62, %v781_v60  ;;  %v787_v3 = vadd.f32 %v786_v1, %v1821_v59 }
 0x244   :  { %1128 = vst [vmem:[%s1917_s5 + $0x90] sm:$0xff] %v1255_v2  ;;  %v1257_v4 = vpack.c.bf16 %v787_v3, %v785_v0 }
 0x246   :  { %1130 = vst [vmem:[%s1917_s5 + $0x9c] sm:$0xff] %v1257_v4  ;;  %v790_v5 = vpop.f32.mrb[28].mxu1 }
 0x247   :  { %v791_v6 = vadd.f32 %v790_v5, %v1815_v57  ;;  %v792_v7 = vpop.f32.mrb[29].mxu1 }
 0x248   :  { %v793_v8 = vadd.f32 %v792_v7, %v1821_v59  ;;  %v794_v9 = vpop.f32.mrb[30].mxu1 }
 0x249   :  { %v795_v10 = vadd.f32 %v794_v9, %v1815_v57  ;;  %v796_v11 = vpop.f32.mrb[31].mxu1 }
 0x24a   :  { %v1259_v12 = vpack.c.bf16 %v793_v8, %v791_v6  ;;  %v797_v13 = vadd.f32 %v796_v11, %v1821_v59 }
 0x24c   :  { %1132 = vst [vmem:[%s1917_s5 + $0xa8] sm:$0xff] %v1259_v12  ;;  %v1261_v14 = vpack.c.bf16 %v797_v13, %v795_v10 }
 0x24e   :  { %1134 = vst [vmem:[%s1917_s5 + $0xb4] sm:$0xff] %v1261_v14 }

</bundles_post_ra>
